<compile_context>
chip_gen: v6e
topology: v6e:2x2x1
jax: 0.10.0
libtpu: 0.0.40
codegen_flags: <defaults>
</compile_context>

<pallas_src>
import functools

import jax
import jax.numpy as jnp
from jax.experimental import pallas as pl
from jax.experimental.pallas import tpu as pltpu


# ---------------------------------------------------------------------------
# Kernels (blocks are (ts, E) row tiles; batch dim squeezed out)
# ---------------------------------------------------------------------------
def _pe_add_kernel(x_ref, pe_ref, o_ref):
    x = x_ref[...].astype(jnp.float32)
    p = pe_ref[...].astype(jnp.float32)
    o_ref[...] = (x + p).astype(o_ref.dtype)


def _pe_add_dropout_rng_kernel(seed_ref, x_ref, pe_ref, o_ref, *, keep_prob):
    """out = dropout(x + pe); keep mask drawn from the TPU hardware PRNG."""
    # Independent stream per (batch, seq-tile) grid cell.
    pltpu.prng_seed(seed_ref[0], pl.program_id(0), pl.program_id(1))
    x = x_ref[...].astype(jnp.float32)
    p = pe_ref[...].astype(jnp.float32)
    bits = pltpu.bitcast(pltpu.prng_random_bits(x.shape), jnp.uint32)
    # Mantissa trick: build a float in [1, 2) from the top 23 random bits,
    # shift to [0, 1).  Pure bit ops + one f32 subtract (no int->float cast).
    u = pltpu.bitcast((bits >> 9) | jnp.uint32(0x3F800000), jnp.float32) - 1.0
    keep = u < keep_prob
    o_ref[...] = jnp.where(keep, (x + p) * (1.0 / keep_prob), 0.0).astype(o_ref.dtype)


def _pe_add_dropout_mask_kernel(x_ref, pe_ref, mask_ref, o_ref):
    """Fallback: mask holds 0.0 (drop) or 1/(1-p) (keep), pre-scaled outside."""
    x = x_ref[...].astype(jnp.float32)
    p = pe_ref[...].astype(jnp.float32)
    m = mask_ref[...].astype(jnp.float32)
    o_ref[...] = ((x + p) * m).astype(o_ref.dtype)


# ---------------------------------------------------------------------------
# Wrapper
# ---------------------------------------------------------------------------
def _choose_seq_tile(S, max_rows=512):
    """Row tile: the whole sequence for small S, else a multiple-of-8 divisor
    of S (no ragged tail) up to max_rows, else max_rows (Pallas masks the
    ragged last block)."""
    if S <= max_rows:
        return S
    for d in range(max_rows, 7, -8):
        if S % d == 0:
            return d
    return max_rows


def position_encoder(x, pe, key, *, dropout_p=0.3, training=True):
    """Pallas port of PositionEncoder.forward: out = dropout(x + pe[:S], p).

    x:   [B, S, E]   (float32 or bfloat16)
    pe:  [max_len, E]
    key: jax PRNG key for the dropout mask (training mode only)
    """
    B, S, E = x.shape
    pe_slice = pe[:S].astype(x.dtype)            # glue: pe[:x.shape[1]]

    ts = _choose_seq_tile(S)
    grid = (B, pl.cdiv(S, ts))

    x_spec = pl.BlockSpec((None, ts, E), lambda b, si: (b, si, 0))
    pe_spec = pl.BlockSpec((ts, E), lambda b, si: (si, 0))
    out_spec = pl.BlockSpec((None, ts, E), lambda b, si: (b, si, 0))
    out_shape = jax.ShapeDtypeStruct((B, S, E), x.dtype)
    compiler_params = pltpu.CompilerParams(
        dimension_semantics=("parallel", "parallel"))

    if not (training and dropout_p > 0.0):
        return pl.pallas_call(
            _pe_add_kernel,
            out_shape=out_shape,
            grid=grid,
            in_specs=[x_spec, pe_spec],
            out_specs=out_spec,
            compiler_params=compiler_params,
        )(x, pe_slice)

    keep_prob = 1.0 - float(dropout_p)

    try:
        # Preferred path: generate the keep mask in-kernel with the HW PRNG,
        # so x is the only large HBM input stream.
        seed = jax.random.randint(key, (1,), 0, jnp.iinfo(jnp.int32).max,
                                  dtype=jnp.int32)
        grid_spec = pltpu.PrefetchScalarGridSpec(
            num_scalar_prefetch=1,
            grid=grid,
            in_specs=[pl.BlockSpec((None, ts, E), lambda b, si, sref: (b, si, 0)),
                      pl.BlockSpec((ts, E), lambda b, si, sref: (si, 0))],
            out_specs=pl.BlockSpec((None, ts, E), lambda b, si, sref: (b, si, 0)),
        )
        out = pl.pallas_call(
            functools.partial(_pe_add_dropout_rng_kernel, keep_prob=keep_prob),
            out_shape=out_shape,
            grid_spec=grid_spec,
            compiler_params=compiler_params,
        )(seed, x, pe_slice)
        return jax.block_until_ready(out)
    except Exception:
        # TODO(synk): the in-kernel PRNG path saves a full HBM mask stream; if
        # it cannot lower on this backend, fall back to streaming a pre-scaled
        # keep mask built with jax.random (previously verified-clean path).
        keep = jax.random.bernoulli(key, keep_prob, (B, S, E))
        mask = keep.astype(x.dtype) * jnp.asarray(1.0 / keep_prob, x.dtype)
        mask_spec = pl.BlockSpec((None, ts, E), lambda b, si: (b, si, 0))
        return pl.pallas_call(
            _pe_add_dropout_mask_kernel,
            out_shape=out_shape,
            grid=grid,
            in_specs=[x_spec, pe_spec, mask_spec],
            out_specs=out_spec,
            compiler_params=compiler_params,
        )(x, pe_slice, mask)


# ---------------------------------------------------------------------------
# Deterministic replica of the module's __init__ PE construction
# ---------------------------------------------------------------------------
def make_pe(key, max_len, embedding_num):
    """The PyTorch code hardcodes div_term of size 50, which forces
    embedding_num == 100 for the strided assignments to be shape-consistent."""
    assert embedding_num == 100, "hardcoded div_term size (50) implies embedding_num=100"
    position = jnp.arange(1, max_len + 1, dtype=jnp.float32)[:, None]             # (max_len, 1)
    div_term = jnp.sort(jax.random.uniform(key, (50,), dtype=jnp.float32))[::-1]  # descending
    pe = jnp.zeros((max_len, embedding_num), dtype=jnp.float32)
    pe = pe.at[:, 0::2].set(jnp.sin(position * div_term))
    pe = pe.at[:, 1::2].set(jnp.cos(position * div_term))
    return pe


if __name__ == "__main__":
    key = jax.random.PRNGKey(0)
    k_pe, k_x, k_drop = jax.random.split(key, 3)

    B, S, E, MAX_LEN = 2, 8, 100, 16   # embedding_num fixed at 100 by the module
    pe = make_pe(k_pe, MAX_LEN, E)
    x = jax.random.normal(k_x, (B, S, E), dtype=jnp.float32)

    # training mode (dropout p=0.3)
    out = position_encoder(x, pe, k_drop, dropout_p=0.3, training=True)
    out = jax.block_until_ready(out)
    assert out.shape == (B, S, E)

    # eval mode must equal plain x + pe[:S]
    out_eval = position_encoder(x, pe, k_drop, dropout_p=0.3, training=False)
    out_eval = jax.block_until_ready(out_eval)
    ref = x + pe[:S][None, :, :]
    assert jnp.allclose(out_eval, ref, atol=1e-6), "eval-mode mismatch vs reference"

    # training-mode sanity: every element is 0 or (x+pe)/(1-p)
    scaled_ref = ref / (1.0 - 0.3)
    ok = jnp.isclose(out, 0.0, atol=1e-6) | jnp.isclose(out, scaled_ref, atol=1e-5)
    assert bool(jnp.all(ok)), "training-mode dropout values out of expected set"

    # dropout statistics sanity (expected keep fraction 0.7; very loose bounds)
    keep_frac = float(jnp.mean((jnp.abs(out) > 1e-6).astype(jnp.float32)))
    assert 0.4 < keep_frac < 0.95, f"keep fraction {keep_frac} implausible for p=0.3"

    print("KERNEL_OK")
</pallas_src>

<mosaic_0001>
module attributes {stable_mosaic.version = 11 : i64} {
  func.func @_pe_add_dropout_rng_kernel(%arg0: i32, %arg1: i32, %arg2: memref<1xi32, #tpu.memory_space<smem>>, %arg3: memref<1x8x100xf32, #tpu.memory_space<vmem>>, %arg4: memref<8x100xf32, #tpu.memory_space<vmem>>, %arg5: memref<1x8x100xf32, #tpu.memory_space<vmem>>) attributes {dimension_semantics = [#tpu.dimension_semantics<parallel>, #tpu.dimension_semantics<parallel>], iteration_bounds = array<i64: 2, 1>, scalar_prefetch = 1 : i64, scratch_operands = 0 : i64, tpu.core_type = #tpu.core_type<tc>, window_params = [{transform_indices = @transform_0, window_bounds = array<i64: 1, 8, 100>}, {transform_indices = @transform_1, window_bounds = array<i64: 8, 100>}, {transform_indices = @transform_2, window_bounds = array<i64: 1, 8, 100>}]} {
    %c0 = arith.constant 0 : index
    %0 = memref.load %arg2[%c0] : memref<1xi32, #tpu.memory_space<smem>>
    "tpu.prng_set_seed_32"(%0, %arg0, %arg1) : (i32, i32, i32) -> ()
    %c0_0 = arith.constant 0 : index
    %c0_1 = arith.constant 0 : index
    %c0_2 = arith.constant 0 : index
    %1 = vector.load %arg3[%c0_0, %c0_1, %c0_2] : memref<1x8x100xf32, #tpu.memory_space<vmem>>, vector<1x8x100xf32>
    %2 = vector.shape_cast %1 : vector<1x8x100xf32> to vector<8x100xf32>
    %c0_3 = arith.constant 0 : index
    %c0_4 = arith.constant 0 : index
    %3 = vector.load %arg4[%c0_3, %c0_4] : memref<8x100xf32, #tpu.memory_space<vmem>>, vector<8x100xf32>
    %4 = "tpu.prng_random_bits"() : () -> vector<8x100xi32>
    %5 = tpu.bitcast %4 : vector<8x100xi32> -> vector<8x100xi32>
    %c9_i32 = arith.constant 9 : i32
    %6 = vector.broadcast %c9_i32 : i32 to vector<8x100xi32>
    %7 = arith.shrui %5, %6 : vector<8x100xi32>
    %c1065353216_i32 = arith.constant 1065353216 : i32
    %8 = vector.broadcast %c1065353216_i32 : i32 to vector<8x100xi32>
    %9 = arith.ori %7, %8 : vector<8x100xi32>
    %10 = tpu.bitcast %9 : vector<8x100xi32> -> vector<8x100xf32>
    %cst = arith.constant 1.000000e+00 : f32
    %11 = vector.broadcast %cst : f32 to vector<8x100xf32>
    %12 = arith.subf %10, %11 : vector<8x100xf32>
    %cst_5 = arith.constant 0.699999988 : f32
    %13 = vector.broadcast %cst_5 : f32 to vector<8x100xf32>
    %14 = arith.cmpf olt, %12, %13 : vector<8x100xf32>
    %15 = arith.addf %2, %3 : vector<8x100xf32>
    %cst_6 = arith.constant 1.42857146 : f32
    %16 = vector.broadcast %cst_6 : f32 to vector<8x100xf32>
    %17 = arith.mulf %15, %16 : vector<8x100xf32>
    %cst_7 = arith.constant 0.000000e+00 : f32
    %18 = vector.broadcast %cst_7 : f32 to vector<8x100xf32>
    %19 = arith.select %14, %17, %18 : vector<8x100xi1>, vector<8x100xf32>
    %c0_8 = arith.constant 0 : index
    %c0_9 = arith.constant 0 : index
    %c0_10 = arith.constant 0 : index
    %20 = vector.load %arg5[%c0_8, %c0_9, %c0_10] : memref<1x8x100xf32, #tpu.memory_space<vmem>>, vector<1x8x100xf32>
    %21 = vector.shape_cast %20 : vector<1x8x100xf32> to vector<8x100xf32>
    %22 = vector.shape_cast %19 : vector<8x100xf32> to vector<1x8x100xf32>
    tpu.vector_store %arg5[%c0_8, %c0_9, %c0_10], %22 {strides = array<i32>} : memref<1x8x100xf32, #tpu.memory_space<vmem>>, vector<1x8x100xf32>,
    return
  }
  func.func @transform_0(%arg0: i32, %arg1: i32, %arg2: memref<1xi32, #tpu.memory_space<smem>>) -> (i32, i32, i32) {
    %c0_i32 = arith.constant 0 : i32
    %c0_i32_0 = arith.constant 0 : i32
    return %arg0, %arg1, %c0_i32 : i32, i32, i32
  }
  func.func @transform_1(%arg0: i32, %arg1: i32, %arg2: memref<1xi32, #tpu.memory_space<smem>>) -> (i32, i32) {
    %c0_i32 = arith.constant 0 : i32
    %c0_i32_0 = arith.constant 0 : i32
    return %arg1, %c0_i32 : i32, i32
  }
  func.func @transform_2(%arg0: i32, %arg1: i32, %arg2: memref<1xi32, #tpu.memory_space<smem>>) -> (i32, i32, i32) {
    %c0_i32 = arith.constant 0 : i32
    %c0_i32_0 = arith.constant 0 : i32
    return %arg0, %arg1, %c0_i32 : i32, i32, i32
  }
}

module attributes {stable_mosaic.version = 11 : i64} {
  func.func @_pe_add_dropout_mask_kernel(%arg0: i32, %arg1: i32, %arg2: memref<1x8x100xf32, #tpu.memory_space<vmem>>, %arg3: memref<8x100xf32, #tpu.memory_space<vmem>>, %arg4: memref<1x8x100xf32, #tpu.memory_space<vmem>>, %arg5: memref<1x8x100xf32, #tpu.memory_space<vmem>>) attributes {dimension_semantics = [#tpu.dimension_semantics<parallel>, #tpu.dimension_semantics<parallel>], iteration_bounds = array<i64: 2, 1>, scalar_prefetch = 0 : i64, scratch_operands = 0 : i64, tpu.core_type = #tpu.core_type<tc>, window_params = [{transform_indices = @transform_0, window_bounds = array<i64: 1, 8, 100>}, {transform_indices = @transform_1, window_bounds = array<i64: 8, 100>}, {transform_indices = @transform_2, window_bounds = array<i64: 1, 8, 100>}, {transform_indices = @transform_3, window_bounds = array<i64: 1, 8, 100>}]} {
    %c0 = arith.constant 0 : index
    %c0_0 = arith.constant 0 : index
    %c0_1 = arith.constant 0 : index
    %0 = vector.load %arg2[%c0, %c0_0, %c0_1] : memref<1x8x100xf32, #tpu.memory_space<vmem>>, vector<1x8x100xf32>
    %1 = vector.shape_cast %0 : vector<1x8x100xf32> to vector<8x100xf32>
    %c0_2 = arith.constant 0 : index
    %c0_3 = arith.constant 0 : index
    %2 = vector.load %arg3[%c0_2, %c0_3] : memref<8x100xf32, #tpu.memory_space<vmem>>, vector<8x100xf32>
    %c0_4 = arith.constant 0 : index
    %c0_5 = arith.constant 0 : index
    %c0_6 = arith.constant 0 : index
    %3 = vector.load %arg4[%c0_4, %c0_5, %c0_6] : memref<1x8x100xf32, #tpu.memory_space<vmem>>, vector<1x8x100xf32>
    %4 = vector.shape_cast %3 : vector<1x8x100xf32> to vector<8x100xf32>
    %5 = arith.addf %1, %2 : vector<8x100xf32>
    %6 = arith.mulf %5, %4 : vector<8x100xf32>
    %c0_7 = arith.constant 0 : index
    %c0_8 = arith.constant 0 : index
    %c0_9 = arith.constant 0 : index
    %7 = vector.load %arg5[%c0_7, %c0_8, %c0_9] : memref<1x8x100xf32, #tpu.memory_space<vmem>>, vector<1x8x100xf32>
    %8 = vector.shape_cast %7 : vector<1x8x100xf32> to vector<8x100xf32>
    %9 = vector.shape_cast %6 : vector<8x100xf32> to vector<1x8x100xf32>
    tpu.vector_store %arg5[%c0_7, %c0_8, %c0_9], %9 {strides = array<i32>} : memref<1x8x100xf32, #tpu.memory_space<vmem>>, vector<1x8x100xf32>,
    return
  }
  func.func @transform_0(%arg0: i32, %arg1: i32) -> (i32, i32, i32) {
    %c0_i32 = arith.constant 0 : i32
    %c0_i32_0 = arith.constant 0 : i32
    return %arg0, %arg1, %c0_i32 : i32, i32, i32
  }
  func.func @transform_1(%arg0: i32, %arg1: i32) -> (i32, i32) {
    %c0_i32 = arith.constant 0 : i32
    %c0_i32_0 = arith.constant 0 : i32
    return %arg1, %c0_i32 : i32, i32
  }
  func.func @transform_2(%arg0: i32, %arg1: i32) -> (i32, i32, i32) {
    %c0_i32 = arith.constant 0 : i32
    %c0_i32_0 = arith.constant 0 : i32
    return %arg0, %arg1, %c0_i32 : i32, i32, i32
  }
  func.func @transform_3(%arg0: i32, %arg1: i32) -> (i32, i32, i32) {
    %c0_i32 = arith.constant 0 : i32
    %c0_i32_0 = arith.constant 0 : i32
    return %arg0, %arg1, %c0_i32 : i32, i32, i32
  }
}

</mosaic_0001>

<bundles_post_ra>
// kernel: tpu_custom_call.1
= control target key start
LH: loop header
LB: loop body
LE: loop exit
PB: predicated region body
PF: predicated region fallthrough
CT: control target
= control target key end

     0   :  { %8 = vsyncpa [#allocation3], 0  ;;  %s867_s0 = inlined_call_operand.hbm [shape: f32[2,8,100], index: 0, kind: input, shape index: {}]   ;;  %s868_s1 = inlined_call_operand.hbm [shape: f32[8,100], index: 1, kind: input, shape index: {}]   ;;  %s869_s2 = inlined_call_operand.hbm [shape: f32[2,8,100], index: 2, kind: input, shape index: {}]   ;;  %s870_s3 = inlined_call_operand.hbm [shape: f32[2,8,100], index: 3, kind: output, shape index: {}]  }
   0x1   :  { %10 = vsyncpa [#allocation3 + $0x1], 0 }
   0x2   :  { %11 = vsyncpa [#allocation6], 0 }
   0x3   :  { %12 = vsyncpa [#allocation4], 0 }
   0x4   :  { %14 = vsyncpa [#allocation4 + $0x1], 0  ;;  %s687_s12 = smov 0   ;;  %s689_s13 = smov 0  }
   0x5   :  { %s691_s14 = smov 0   ;;  %s693_s15 = smov 0  }
   0x6   :  { %s695_s16 = smov 0   ;;  %s697_s17 = smov 0  }
   0x7 LB: > { %s32_s18 = sadd.s32 1, %s657_s16  ;;  %s41_s19 = sadd.s32 1, %s649_s14  ;;  %s661_s17 = sphi %s697_s17, %s20_s17   ;;  %s657_s16 = sphi %s695_s16, %s891_s16   ;;  %s653_s15 = sphi %s693_s15, %s890_s15   ;;  %s649_s14 = sphi %s691_s14, %s889_s14   ;;  %s645_s13 = sphi %s689_s13, %s888_s13   ;;  %s641_s12 = sphi %s687_s12, %s887_s12  }
   0x8   : > { %p34_p0 = scmp.ge.s32.totalorder %s32_s18, 2  ;;  %p48_p1 = scmp.ne.s32.totalorder %s649_s14, %s645_s13 }
   0x9   : > { %p49_p2 = scmp.eq.s32.totalorder %s661_s17, 0  ;;  %p439_p5 = scmp.lt.s32.totalorder %s661_s17, 2 }
   0xa   : > { %s893_s18 = smov (%p34_p0, %s32_s18), 0  ;;  %s173_s21 = sand.u32 1, %s661_s17  }
   0xb   : > { %p50_p4 = por %p49_p2, %p48_p1  ;;  %s36_s20 = ssub.s32 %s657_s16, %s893_s18 }
   0xc   : > { %p39_p6 = scmp.eq.s32.totalorder %s36_s20, 0  ;;  %s175_s22 = sand.u32 1, %s649_s14  }
   0xd   : > { %s401_s23 = sshll.u32 %s657_s16, 7  ;;  %s737_s25 = sshll.u32 %s175_s22, 3 }
   0xe   : > { %s735_s24 = scalar_select %p39_p6, %s649_s14, %s41_s19  }
   0xf   : > { %s183_s28 = scalar_lea.hbm %s867_s0, %s401_s23  ;;  %p744_p7 = pnand %p439_p5, %p50_p4 }
  0x10   : > { %s177_s30 = scalar_lea.vmem [#allocation2], %s737_s25  ;;  %s749_s5 = scalar_lea.sflag [#allocation3], %s173_s21 }
  0x11   : > { %s185_s4 = sshll.u32 %s177_s30, 4  ;;  %p493_p8 = pneg %p744_p7  ;;  %s186_s4 = int_to_ptr.vmem [resolvable:$true] %s185_s4 }
  0x12   : > { %s504_s6 = scalar_lea.vmem %s186_s4, 128  ;;  %s663_s7 = smov [#allocation2]  }
  0x13   : > { %p505_p9 = scmp.ne.s32.totalorder %s186_s4, %s504_s6  ;;  %s509_s8 = sshll.u32 %s663_s7, 4  ;;  %s510_s8 = int_to_ptr.vmem [resolvable:$false] %s509_s8 }
  0x14   : > { %s511_s9 = scalar_lea.vmem %s510_s8, 256  ;;  %p512_p12 = scmp.lt.s32.totalorder %s186_s4, %s510_s8 }
  0x15   : > { %p507_p10 = pnand %p505_p9, %p493_p8  ;;  %p513_p13 = scmp.lt.s32.totalorder %s511_s9, %s504_s6 }
  0x17   : > { %p508_p11 = pneg %p507_p10  ;;  %p514_p0 = por %p513_p13, %p512_p12 }
  0x19   : > { %p515_p2 = pnand %p514_p0, %p508_p11 }
  0x1b   : > { %518 = shalt.err (!%p515_p2)
}
  0x1c   : > { %430 = dma.hbm_to_vmem [thread:$0]  (!%p744_p7), %s183_s28, 128, %s186_s4, %s749_s5  }
  0x1d   : > { %s760_s10 = sadd.s32 4294967295, %s661_s17   ;;  %s396_s11 = sadd.s32 4294967294, %s661_s17  }
  0x1e   : > { %p54_p4 = scmp.ne.s32.totalorder %s645_s13, %s641_s12  ;;  %p871_p5 = scmp.eq.s32.totalorder %s760_s10, 0 }
  0x1f   : > { %p134_p6 = scmp.eq.s32.totalorder %s760_s10, 1  ;;  %p140_p9 = scmp.eq.s32.totalorder %s396_s11, 1 }
  0x20   : > { %p397_p10 = scmp.ge.s32.totalorder %s661_s17, 1  ;;  %p770_p11 = por %p871_p5, %p54_p4 }
  0x21   : > { %p777_p12 = por %p134_p6, %p48_p1  ;;  %p781_p13 = por %p140_p9, %p54_p4 }
  0x22   : > { %s875_s19 = scalar_select %p770_p11, 1, 0 }
  0x23   : > { %s876_s20 = scalar_select %p777_p12, 1, 0 }
  0x24   : > { %s877_s21 = scalar_select %p781_p13, 1, 0 }
  0x25   : > { %p147_p0 = scmp.lt.s32.totalorder %s661_s17, 3  ;;  %s202_s27 = scalar_lea.hbm %s869_s2, %s401_s23 }
  0x26   : > { %s664_s30 = smov [#allocation5]   ;;  %s196_s6 = scalar_lea.vmem [#allocation7], %s737_s25 }
  0x27   : > { %p791_p2 = pnand %p397_p10, %p147_p0  ;;  %s162_s4 = sshll.u32 %s664_s30, 4  ;;  %s163_s4 = int_to_ptr.vmem [resolvable:$true] %s162_s4 }
  0x28   : > { %s204_s7 = sshll.u32 %s196_s6, 4  ;;  %s665_s9 = smov [#allocation7]   ;;  %s205_s7 = int_to_ptr.vmem [resolvable:$true] %s204_s7 }
  0x29   : > { %s532_s8 = scalar_lea.vmem %s205_s7, 128  ;;  %s537_s23 = sshll.u32 %s665_s9, 4  ;;  %s538_s23 = int_to_ptr.vmem [resolvable:$false] %s537_s23 }
  0x2a   : > { %p533_p4 = scmp.ne.s32.totalorder %s205_s7, %s532_s8  ;;  %s539_s11 = scalar_lea.vmem %s538_s23, 256 }
  0x2b   : > { %p540_p10 = scmp.lt.s32.totalorder %s205_s7, %s538_s23  ;;  %p541_p0 = scmp.lt.s32.totalorder %s539_s11, %s532_s8 }
  0x2c   : > { %p535_p6 = pnand %p533_p4, %p493_p8 }
  0x2d   : > { %p542_p3 = por %p541_p0, %p540_p10 }
  0x2e   : > { %p536_p9 = pneg %p535_p6 }
  0x30   : > { %p543_p5 = pnand %p542_p3, %p536_p9 }
  0x32   : > { %546 = shalt.err (!%p543_p5)
}
  0x33   : > { %433 = dma.hbm_to_vmem [thread:$0]  (!%p744_p7), %s202_s27, 128, %s205_s7, %s749_s5  }
  0x34   : > { %p879_p1 = scmp.eq.s32.totalorder %s760_s10, 0  ;;  %p880_p8 = pneg %p791_p2 }
  0x35   : > { %s558_s25 = scalar_lea.vmem %s163_s4, 128  ;;  %p566_p0 = scmp.lt.s32.totalorder %s163_s4, %s163_s4 }
  0x36   : > { %p424_p4 = pnand %p880_p8, %p879_p1  ;;  %p559_p13 = scmp.ne.s32.totalorder %s163_s4, %s558_s25 }
  0x37   : > { %p567_p10 = scmp.lt.s32.totalorder %s558_s25, %s558_s25 }
  0x38   : > { %p549_p6 = pneg %p424_p4 }
  0x39   : > { %p568_p3 = por %p567_p10, %p566_p0 }
  0x3a   : > { %p561_p12 = pnand %p559_p13, %p549_p6 }
  0x3c   : > { %p562_p11 = pneg %p561_p12 }
  0x3e   : > { %p569_p5 = pnand %p568_p3, %p562_p11 }
  0x40   : > { %572 = shalt.err (!%p569_p5)
}
  0x41   : > { %426 = dma.hbm_to_vmem [thread:$0]  (!%p424_p4), %s868_s1, 128, %s163_s4, [#allocation6]  }
  0x42   : > { %213 = sbr.rel (%p791_p2) target bundleno = 103 (0x67), region = 32  ;;  %s215_s5 = sand.u32 (!%p791_p2), 1, %s760_s10  }
  0x43   : > { %s217_s26 = sand.u32 (!%p791_p2), 1, %s645_s13   ;;  %s216_s30 = scalar_lea.sflag (!%p791_p2), [#allocation3], %s215_s5 }
  0x44   : > { %s405_s27 = sshll.u32 (!%p791_p2), %s217_s26, 3  ;;  %p881_p7 = scmp.ne.s32.totalorder (!%p791_p2), %s875_s19, 0 }
  0x45   : > { %s219_s6 = scalar_lea.vmem (!%p791_p2), [#allocation2], %s405_s27 }
  0x47   : > { %624 = dma.done.wait (%p881_p7), %s216_s30, 128  }
  0x48   : > { %626 = vsyncadd (%p881_p7), %s216_s30, 4294967168  ;;  %p882_p11 = scmp.eq.s32.totalorder %s760_s10, 0 }
  0x4a   : > { %628 = dma.done.wait (%p882_p11), [#allocation6], 128   ;;  %p883_p12 = pmov %p882_p11 }
  0x4b   : > { %s232_s28 = scalar_lea.vmem [#allocation7], %s405_s27 }
  0x4c   : > { %630 = vsyncadd (%p883_p12), [#allocation6], 4294967168 }
  0x4d   : > { %632 = dma.done.wait (%p881_p7), %s216_s30, 128  }
  0x4e   : > { %634 = vsyncadd (%p881_p7), %s216_s30, 4294967168  ;;  %v260_v0 = vld [vmem:[%s219_s6] sm:$0xff]  ;;  %v261_v1 = vld [vmem:[#allocation5] sm:$0xff]  ;;  %s259_s4 = scalar_lea.vmem [#allocation8], %s405_s27  ;;  %s410_s8 = sshll.u32 %s653_s15, 7  ;;  %vm265_vm0 = vcmask 818176  }
  0x4f   : > { %v262_v2 = vld [vmem:[%s232_s28] sm:$0xff]  ;;  %s282_s7 = sshll.u32 %s259_s4, 4  ;;  %v263_v3 = vadd.f32 %v261_v1, %v260_v0  ;;  %s280_s23 = scalar_lea.hbm %s870_s3, %s410_s8  ;;  %s283_s7 = int_to_ptr.vmem [resolvable:$true] %s282_s7 }
  0x50   : > { %s268_s11 = scalar_lea.sflag [#allocation4], %s217_s26  ;;  %s573_s19 = scalar_lea.vmem %s283_s7, 128 }
  0x51   : > { %v264_v4 = vmul.f32 %v263_v3, %v262_v2  ;;  %p574_p13 = scmp.ne.s32.totalorder %s283_s7, %s573_s19  ;;  %p884_p2 = scmp.ne.s32.totalorder %s876_s20, 0 }
  0x52   : > { %s666_s25 = smov [#allocation8]  }
  0x53   : > { %266 = vst.msk [vmem:[%s259_s4] sm:$0xff] %vm265_vm0, %v264_v4  ;;  %p575_p1 = pnand %p574_p13, %p884_p2  ;;  %s577_s29 = sshll.u32 %s666_s25, 4  ;;  %s578_s29 = int_to_ptr.vmem [resolvable:$false] %s577_s29 }
  0x54   : > { %s579_s22 = scalar_lea.vmem %s578_s29, 256  ;;  %p580_p8 = scmp.lt.s32.totalorder %s283_s7, %s578_s29 }
  0x55   : > { %p576_p9 = pneg %p575_p1  ;;  %p581_p4 = scmp.lt.s32.totalorder %s579_s22, %s573_s19 }
  0x57   : > { %p582_p6 = por %p581_p4, %p580_p8 }
  0x59   : > { %p583_p0 = pnand %p582_p6, %p576_p9 }
  0x5b   : > { %586 = shalt.err (!%p583_p0)
}
  0x5c   : > { %s587_s15 = scalar_lea.hbm %s280_s23, 128  ;;  %s591_s27 = scalar_lea.hbm %s870_s3, 256 }
  0x5d   : > { %p588_p10 = scmp.ne.s32.totalorder %s280_s23, %s587_s15  ;;  %p592_p7 = scmp.lt.s32.totalorder %s280_s23, %s870_s3 }
  0x5e   : > { %p593_p11 = scmp.lt.s32.totalorder %s591_s27, %s587_s15 }
  0x5f   : > { %p589_p3 = pnand %p588_p10, %p884_p2 }
  0x60   : > { %p594_p12 = por %p593_p11, %p592_p7 }
  0x61   : > { %p590_p5 = pneg %p589_p3 }
  0x63   : > { %p595_p13 = pnand %p594_p12, %p590_p5 }
  0x65   : > { %598 = shalt.err (!%p595_p13)
}
  0x66   : > { %421 = dma.vmem_to_hbm [thread:$0]  (%p884_p2), %s283_s7, 128, %s280_s23, %s268_s11  }
  0x67 PF: > { %s294_s28 = sand.u32 1, %s641_s12   ;;  %p885_p1 = scmp.ne.s32.totalorder %s877_s21, 0 }
  0x68   : > { %p886_p9 = scmp.ge.s32.totalorder %s661_s17, 2  ;;  %s295_s4 = scalar_lea.sflag [#allocation4], %s294_s28 }
  0x6a   : > { %p435_p8 = pnand %p886_p9, %p885_p1 }
  0x6c   : > { %p436_p4 = pneg %p435_p8 }
  0x6e   : > { %636 = dma.done.wait (%p436_p4), %s295_s4, 128  }
  0x6f   : > { %638 = vsyncadd (%p436_p4), %s295_s4, 4294967168  ;;  %s20_s17 = sadd.s32 1, %s661_s17   ;;  %s887_s12 = smov %s645_s13 }
  0x70   : > { %p17_p6 = scmp.ge.s32.totalorder %s20_s17, 4   ;;  %s888_s13 = smov %s649_s14 }
  0x71   : > { %s889_s14 = smov %s735_s24  ;;  %s890_s15 = smov %s657_s16 }
  0x72   : > { %s891_s16 = smov %s893_s18  ;;  %19 = sbr.rel (!%p17_p6) target bundleno = 7 (0x7), region = 93 }
  0x77   :  { %300 = vsyncpa [#allocation3], 1 }
  0x78   :  { %302 = vsyncpa [#allocation3 + $0x1], 1 }
  0x79   :  { %303 = vsyncpa [#allocation6], 1 }
  0x7a   :  { %304 = vsyncpa [#allocation4], 1 }
  0x7b   :  { %306 = vsyncpa [#allocation4 + $0x1], 1 }

</bundles_post_ra>
